<compile_context>
chip_gen: v7x
topology: tpu7x:2x2x1
jax: 0.10.0
libtpu: 0.0.40
codegen_flags: <defaults>
</compile_context>

<pallas_src>
import functools

import jax
import jax.numpy as jnp
from jax.experimental import pallas as pl
from jax.experimental.pallas import tpu as pltpu

NUM_EMBD = 192
HIDDEN = 4 * NUM_EMBD          # 768
DROPOUT_P = 0.3


def _round_up(x, m):
    return ((x + m - 1) // m) * m


def _ffn_core(x_ref, w1_ref, b1_ref, w2_ref, b2_ref):
    """Linear -> ReLU -> Linear in f32 accumulation (operands bf16)."""
    h = jnp.dot(x_ref[...], w1_ref[...], preferred_element_type=jnp.float32)
    h = jnp.maximum(h + b1_ref[...], 0.0)                       # ReLU (f32)
    y = jnp.dot(h.astype(w2_ref.dtype), w2_ref[...],
                preferred_element_type=jnp.float32)
    return y + b2_ref[...]


def ffn_eval_kernel(x_ref, w1_ref, b1_ref, w2_ref, b2_ref, o_ref):
    y = _ffn_core(x_ref, w1_ref, b1_ref, w2_ref, b2_ref)
    o_ref[...] = y.astype(o_ref.dtype)


def ffn_train_kernel(x_ref, w1_ref, b1_ref, w2_ref, b2_ref, u_ref, o_ref,
                     *, dropout_p: float):
    y = _ffn_core(x_ref, w1_ref, b1_ref, w2_ref, b2_ref)
    # Inverted dropout: keep with prob (1-p), scale survivors by 1/(1-p).
    # Single compare + multiply (mask*scale), no int->float conversion in-kernel.
    scale = 1.0 / (1.0 - dropout_p)
    keep = (u_ref[...] >= dropout_p).astype(jnp.float32) * scale
    o_ref[...] = (y * keep).astype(o_ref.dtype)


def feed_forward(x, w1, b1, w2, b2, *, training=False, rng_key=None,
                 dropout_p=DROPOUT_P, tm=1024,
                 compute_dtype=jnp.bfloat16,
                 vmem_limit_bytes=48 * 1024 * 1024):
    """x: (B, T, D) float32.  Returns (B, T, D) float32."""
    B, T, D = x.shape
    H = w1.shape[1]
    M = B * T

    # Row tile: big for MXU occupancy, but never (much) larger than M.
    # Round to a multiple of 16 so bf16 sublane packing stays clean.
    tm = max(16, min(int(tm), _round_up(M, 16)))
    Mp = _round_up(M, tm)

    x2 = x.reshape(M, D)
    if Mp != M:
        x2 = jnp.pad(x2, ((0, Mp - M), (0, 0)))
    x2 = x2.astype(compute_dtype)
    w1c = w1.astype(compute_dtype)
    w2c = w2.astype(compute_dtype)
    b1f = b1.astype(jnp.float32)
    b2f = b2.astype(jnp.float32)

    grid = (Mp // tm,)
    x_spec = pl.BlockSpec((tm, D), lambda i: (i, 0))
    w1_spec = pl.BlockSpec((D, H), lambda i: (0, 0))     # resident
    b1_spec = pl.BlockSpec((1, H), lambda i: (0, 0))
    w2_spec = pl.BlockSpec((H, D), lambda i: (0, 0))     # resident
    b2_spec = pl.BlockSpec((1, D), lambda i: (0, 0))
    out_spec = pl.BlockSpec((tm, D), lambda i: (i, 0))   # lane-dense (D=192 full)

    cparams = pltpu.CompilerParams(
        dimension_semantics=("parallel",),
        vmem_limit_bytes=vmem_limit_bytes,
    )
    out_shape = jax.ShapeDtypeStruct((Mp, D), jnp.float32)

    if not training:
        out = pl.pallas_call(
            ffn_eval_kernel,
            out_shape=out_shape,
            grid=grid,
            in_specs=[x_spec, w1_spec, b1_spec, w2_spec, b2_spec],
            out_specs=out_spec,
            compiler_params=cparams,
        )(x2, w1c, b1f, w2c, b2f)
    else:
        if rng_key is None:
            rng_key = jax.random.PRNGKey(0)
        u = jax.random.uniform(rng_key, (Mp, D), jnp.float32)
        kernel = functools.partial(ffn_train_kernel, dropout_p=float(dropout_p))
        out = pl.pallas_call(
            kernel,
            out_shape=out_shape,
            grid=grid,
            in_specs=[x_spec, w1_spec, b1_spec, w2_spec, b2_spec,
                      pl.BlockSpec((tm, D), lambda i: (i, 0))],
            out_specs=out_spec,
            compiler_params=cparams,
        )(x2, w1c, b1f, w2c, b2f, u)

    return out[:M].reshape(B, T, D)


def init_params(key, d=NUM_EMBD, h=HIDDEN, dtype=jnp.float32):
    """Deterministic init mimicking torch.nn.Linear default U(-1/sqrt(fan_in), +)."""
    k1, k2, k3, k4 = jax.random.split(key, 4)
    lim1 = 1.0 / (d ** 0.5)
    lim2 = 1.0 / (h ** 0.5)
    w1 = jax.random.uniform(k1, (d, h), dtype, -lim1, lim1)   # stored as (in, out)
    b1 = jax.random.uniform(k2, (1, h), dtype, -lim1, lim1)
    w2 = jax.random.uniform(k3, (h, d), dtype, -lim2, lim2)
    b2 = jax.random.uniform(k4, (1, d), dtype, -lim2, lim2)
    return w1, b1, w2, b2


if __name__ == "__main__":
    key = jax.random.PRNGKey(0)
    kx, kp, kd = jax.random.split(key, 3)

    B, T = 2, 8
    x = jax.random.normal(kx, (B, T, NUM_EMBD), jnp.float32)
    w1, b1, w2, b2 = init_params(kp)

    # Eval-mode forward (Dropout is identity in eval).
    out = jax.block_until_ready(feed_forward(x, w1, b1, w2, b2, training=False))
    assert out.shape == (B, T, NUM_EMBD)

    # Pure-JAX reference mimicking the kernel's bf16-operand / f32-accumulate math.
    xb = x.reshape(-1, NUM_EMBD).astype(jnp.bfloat16)
    w1b = w1.astype(jnp.bfloat16)
    w2b = w2.astype(jnp.bfloat16)
    h_ref = jnp.maximum(
        jnp.dot(xb, w1b, preferred_element_type=jnp.float32) + b1, 0.0)
    ref = jnp.dot(h_ref.astype(jnp.bfloat16), w2b,
                  preferred_element_type=jnp.float32) + b2
    ref = ref.reshape(B, T, NUM_EMBD)
    err = float(jnp.max(jnp.abs(out - ref)))
    assert jnp.allclose(out, ref, atol=2e-2, rtol=2e-2), err

    # Training (dropout) path smoke test: right shape, finite, ~30% zeros.
    out_tr = jax.block_until_ready(
        feed_forward(x, w1, b1, w2, b2, training=True, rng_key=kd))
    assert out_tr.shape == (B, T, NUM_EMBD)
    assert bool(jnp.isfinite(out_tr).all())
    zero_frac = float(jnp.mean(out_tr == 0.0))
    assert 0.1 < zero_frac < 0.5, zero_frac

    print("KERNEL_OK")
</pallas_src>

<mosaic_0001>
module attributes {stable_mosaic.version = 11 : i64} {
  func.func @ffn_eval_kernel(%arg0: i32, %arg1: memref<16x192xbf16, #tpu.memory_space<vmem>>, %arg2: memref<192x768xbf16, #tpu.memory_space<vmem>>, %arg3: memref<1x768xf32, #tpu.memory_space<vmem>>, %arg4: memref<768x192xbf16, #tpu.memory_space<vmem>>, %arg5: memref<1x192xf32, #tpu.memory_space<vmem>>, %arg6: memref<16x192xf32, #tpu.memory_space<vmem>>) attributes {dimension_semantics = [#tpu.dimension_semantics<parallel>], iteration_bounds = array<i64: 1>, scalar_prefetch = 0 : i64, scratch_operands = 0 : i64, tpu.core_type = #tpu.core_type<tc>, window_params = [{transform_indices = @transform_0, window_bounds = array<i64: 16, 192>}, {pipeline_mode = #tpu.pipeline_mode<synchronous>, transform_indices = @transform_1, window_bounds = array<i64: 192, 768>}, {pipeline_mode = #tpu.pipeline_mode<synchronous>, transform_indices = @transform_2, window_bounds = array<i64: 1, 768>}, {pipeline_mode = #tpu.pipeline_mode<synchronous>, transform_indices = @transform_3, window_bounds = array<i64: 768, 192>}, {pipeline_mode = #tpu.pipeline_mode<synchronous>, transform_indices = @transform_4, window_bounds = array<i64: 1, 192>}, {transform_indices = @transform_5, window_bounds = array<i64: 16, 192>}]} {
    %c0 = arith.constant 0 : index
    %c0_0 = arith.constant 0 : index
    %0 = vector.load %arg1[%c0, %c0_0] : memref<16x192xbf16, #tpu.memory_space<vmem>>, vector<16x192xbf16>
    %c0_1 = arith.constant 0 : index
    %c0_2 = arith.constant 0 : index
    %1 = vector.load %arg2[%c0_1, %c0_2] : memref<192x768xbf16, #tpu.memory_space<vmem>>, vector<192x768xbf16>
    %cst = arith.constant dense<0.000000e+00> : vector<16x768xf32>
    %2 = tpu.matmul %0, %1, %cst {dimension_numbers = #tpu.dot_dimension_numbers<[1], [0], [0], [1], [0, 0, 1, 1], [], []>} : vector<16x192xbf16>, vector<192x768xbf16>, vector<16x768xf32> -> vector<16x768xf32>
    %c0_3 = arith.constant 0 : index
    %c0_4 = arith.constant 0 : index
    %3 = vector.load %arg3[%c0_3, %c0_4] : memref<1x768xf32, #tpu.memory_space<vmem>>, vector<1x768xf32>
    %4 = vector.broadcast %3 : vector<1x768xf32> to vector<16x768xf32>
    %5 = arith.addf %2, %4 : vector<16x768xf32>
    %cst_5 = arith.constant 0.000000e+00 : f32
    %6 = vector.broadcast %cst_5 : f32 to vector<16x768xf32>
    %7 = arith.maximumf %5, %6 : vector<16x768xf32>
    %8 = arith.truncf %7 : vector<16x768xf32> to vector<16x768xbf16>
    %c0_6 = arith.constant 0 : index
    %c0_7 = arith.constant 0 : index
    %9 = vector.load %arg4[%c0_6, %c0_7] : memref<768x192xbf16, #tpu.memory_space<vmem>>, vector<768x192xbf16>
    %cst_8 = arith.constant dense<0.000000e+00> : vector<16x192xf32>
    %10 = tpu.matmul %8, %9, %cst_8 {dimension_numbers = #tpu.dot_dimension_numbers<[1], [0], [0], [1], [0, 0, 1, 1], [], []>} : vector<16x768xbf16>, vector<768x192xbf16>, vector<16x192xf32> -> vector<16x192xf32>
    %c0_9 = arith.constant 0 : index
    %c0_10 = arith.constant 0 : index
    %11 = vector.load %arg5[%c0_9, %c0_10] : memref<1x192xf32, #tpu.memory_space<vmem>>, vector<1x192xf32>
    %12 = vector.broadcast %11 : vector<1x192xf32> to vector<16x192xf32>
    %13 = arith.addf %10, %12 : vector<16x192xf32>
    %c0_11 = arith.constant 0 : index
    %c0_12 = arith.constant 0 : index
    %14 = vector.load %arg6[%c0_11, %c0_12] : memref<16x192xf32, #tpu.memory_space<vmem>>, vector<16x192xf32>
    tpu.vector_store %arg6[%c0_11, %c0_12], %13 {strides = array<i32>} : memref<16x192xf32, #tpu.memory_space<vmem>>, vector<16x192xf32>,
    return
  }
  func.func @transform_0(%arg0: i32) -> (i32, i32) {
    %c0_i32 = arith.constant 0 : i32
    %c0_i32_0 = arith.constant 0 : i32
    return %arg0, %c0_i32 : i32, i32
  }
  func.func @transform_1(%arg0: i32) -> (i32, i32) {
    %c0_i32 = arith.constant 0 : i32
    %c0_i32_0 = arith.constant 0 : i32
    %c0_i32_1 = arith.constant 0 : i32
    return %c0_i32, %c0_i32_0 : i32, i32
  }
  func.func @transform_2(%arg0: i32) -> (i32, i32) {
    %c0_i32 = arith.constant 0 : i32
    %c0_i32_0 = arith.constant 0 : i32
    %c0_i32_1 = arith.constant 0 : i32
    return %c0_i32, %c0_i32_0 : i32, i32
  }
  func.func @transform_3(%arg0: i32) -> (i32, i32) {
    %c0_i32 = arith.constant 0 : i32
    %c0_i32_0 = arith.constant 0 : i32
    %c0_i32_1 = arith.constant 0 : i32
    return %c0_i32, %c0_i32_0 : i32, i32
  }
  func.func @transform_4(%arg0: i32) -> (i32, i32) {
    %c0_i32 = arith.constant 0 : i32
    %c0_i32_0 = arith.constant 0 : i32
    %c0_i32_1 = arith.constant 0 : i32
    return %c0_i32, %c0_i32_0 : i32, i32
  }
  func.func @transform_5(%arg0: i32) -> (i32, i32) {
    %c0_i32 = arith.constant 0 : i32
    %c0_i32_0 = arith.constant 0 : i32
    return %arg0, %c0_i32 : i32, i32
  }
}

</mosaic_0001>

<bundles_post_ra>
// kernel: tpu_custom_call.1
= control target key start
LH: loop header
LB: loop body
LE: loop exit
PB: predicated region body
PF: predicated region fallthrough
CT: control target
= control target key end

     0   :  { %vm497_vm0 = vcmask 523264   ;;  %s2447_s0 = inlined_call_operand.vmem [shape: bf16[16,192], index: 0, kind: input, shape index: {}]   ;;  %s2448_s1 = inlined_call_operand.vmem [shape: bf16[192,768], index: 1, kind: input, shape index: {}]   ;;  %s2449_s2 = inlined_call_operand.vmem [shape: f32[1,768], index: 2, kind: input, shape index: {}]   ;;  %s2450_s3 = inlined_call_operand.vmem [shape: bf16[768,192], index: 3, kind: input, shape index: {}]   ;;  %s2451_s4 = inlined_call_operand.vmem [shape: f32[1,192], index: 4, kind: input, shape index: {}]   ;;  %s2452_s5 = inlined_call_operand.hbm [shape: f32[16,192], index: 5, kind: output, shape index: {}]  }
   0x1   :  { %v1573_v0 = vld [vmem:[%s2448_s1 + $0xc] ss:$24 sps:$4 sm:$0xff]   ;;  %v1575_v1 = vld [vmem:[%s2448_s1 + $0x8] ss:$24 sps:$4 sm:$0xff]   ;;  %v1576_v2 = vld [vmem:[%s2448_s1 + $0x3c] ss:$24 sps:$4 sm:$0xff]  }
   0x2   :  { %544 = vmatprep.subr.bf16.mxu1 %v1573_v0  ;;  %v1578_v3 = vld [vmem:[%s2448_s1 + $0x38] ss:$24 sps:$4 sm:$0xff]   ;;  %v1579_v4 = vld [vmem:[%s2448_s1 + $0x6c] ss:$24 sps:$4 sm:$0xff]   ;;  %v1583_v7 = vld [vmem:[%s2448_s1 + $0x68] ss:$24 sps:$4 sm:$0xff]  }
   0x3   :  { %545 = vmatpush1.bf16.msra.mxu1 %v1575_v1  ;;  %v1581_v5 = vld [vmem:[%s2448_s1 + $0x4] ss:$24 sps:$4 sm:$0xff]   ;;  %v1584_v6 = vld [vmem:[%s2448_s1] ss:$24 sps:$4 sm:$0xff]   ;;  %v1587_v8 = vld [vmem:[%s2448_s1 + $0x34] ss:$24 sps:$4 sm:$0xff]  }
   0x4   :  { %546 = vmatprep.subr.bf16.mxu1 %v1576_v2  ;;  %501 = vmatprep.subr.bf16.mxu0 %v1581_v5  ;;  %v1590_v9 = vld [vmem:[%s2448_s1 + $0x30] ss:$24 sps:$4 sm:$0xff]   ;;  %v1585_v10 = vld [vmem:[%s2448_s1 + $0x9c] ss:$24 sps:$4 sm:$0xff]   ;;  %v1596_v13 = vld [vmem:[%s2448_s1 + $0x60] ss:$24 sps:$4 sm:$0xff]  }
   0x5   :  { %502 = vmatpush1.bf16.msra.mxu0 %v1584_v6  ;;  %v1593_v11 = vld [vmem:[%s2448_s1 + $0x64] ss:$24 sps:$4 sm:$0xff]   ;;  %v1589_v12 = vld [vmem:[%s2448_s1 + $0x98] ss:$24 sps:$4 sm:$0xff]   ;;  %v1599_v15 = vld [vmem:[%s2448_s1 + $0x94] ss:$24 sps:$4 sm:$0xff]  }
   0x6   :  { %503 = vmatprep.subr.bf16.mxu0 %v1587_v8  ;;  %v1591_v14 = vld [vmem:[%s2448_s1 + $0xcc] ss:$24 sps:$4 sm:$0xff]   ;;  %v1595_v16 = vld [vmem:[%s2448_s1 + $0xc8] ss:$24 sps:$4 sm:$0xff]   ;;  %v1597_v17 = vld [vmem:[%s2448_s1 + $0xfc] ss:$24 sps:$4 sm:$0xff]  }
   0x7   :  { %547 = vmatpush1.bf16.msra.mxu1 %v1578_v3  ;;  %v1602_v18 = vld [vmem:[%s2448_s1 + $0x90] ss:$24 sps:$4 sm:$0xff]   ;;  %v1605_v19 = vld [vmem:[%s2448_s1 + $0xc4] ss:$24 sps:$4 sm:$0xff]   ;;  %v1608_v21 = vld [vmem:[%s2448_s1 + $0xc0] ss:$24 sps:$4 sm:$0xff]  }
   0x8   :  { %548 = vmatprep.subr.bf16.mxu1 %v1579_v4  ;;  %v1601_v20 = vld [vmem:[%s2448_s1 + $0xf8] ss:$24 sps:$4 sm:$0xff]   ;;  %v1603_v22 = vld [vmem:[%s2448_s1 + $0x12c] ss:$24 sps:$4 sm:$0xff]   ;;  %v1607_v24 = vld [vmem:[%s2448_s1 + $0x128] ss:$24 sps:$4 sm:$0xff]  }
   0x9   :  { %504 = vmatpush1.bf16.msra.mxu0 %v1590_v9  ;;  %v1611_v23 = vld [vmem:[%s2448_s1 + $0xf4] ss:$24 sps:$4 sm:$0xff]   ;;  %v1614_v26 = vld [vmem:[%s2448_s1 + $0xf0] ss:$24 sps:$4 sm:$0xff]   ;;  %v1617_v27 = vld [vmem:[%s2448_s1 + $0x124] ss:$24 sps:$4 sm:$0xff]  }
   0xa   :  { %505 = vmatprep.subr.bf16.mxu0 %v1593_v11  ;;  %v1609_v25 = vld [vmem:[%s2448_s1 + $0x15c] ss:$24 sps:$4 sm:$0xff]   ;;  %v1613_v28 = vld [vmem:[%s2448_s1 + $0x158] ss:$24 sps:$4 sm:$0xff]   ;;  %v1615_v30 = vld [vmem:[%s2448_s1 + $0x18c] ss:$24 sps:$4 sm:$0xff]  }
   0xb   :  { %549 = vmatpush1.bf16.msra.mxu1 %v1583_v7  ;;  %v1620_v29 = vld [vmem:[%s2448_s1 + $0x120] ss:$24 sps:$4 sm:$0xff]   ;;  %v1623_v31 = vld [vmem:[%s2448_s1 + $0x154] ss:$24 sps:$4 sm:$0xff]   ;;  %v1626_v35 = vld [vmem:[%s2448_s1 + $0x150] ss:$24 sps:$4 sm:$0xff]  }
   0xc   :  { %550 = vmatprep.subr.bf16.mxu1 %v1585_v10  ;;  %v1619_v32 = vld [vmem:[%s2448_s1 + $0x188] ss:$24 sps:$4 sm:$0xff]   ;;  %v1639_v33 = vld [vmem:[%s2447_s0 + $0x4] ss:$8 sps:$4 sm:$0xff]   ;;  %v1621_v34 = vld [vmem:[%s2448_s1 + $0x1bc] ss:$24 sps:$4 sm:$0xff]  }
   0xd   :  { %506 = vmatpush1.bf16.msra.mxu0 %v1596_v13  ;;  %v1629_v36 = vld [vmem:[%s2448_s1 + $0x184] ss:$24 sps:$4 sm:$0xff]   ;;  %1460 = vmatprep.mubr.msk.bf16.mxu1 %vm497_vm0, %v1639_v33  ;;  %v1625_v37 = vld [vmem:[%s2448_s1 + $0x1b8] ss:$24 sps:$4 sm:$0xff]   ;;  %v1635_v40 = vld [vmem:[%s2448_s1 + $0x1b4] ss:$24 sps:$4 sm:$0xff]  }
   0xe   :  { %507 = vmatprep.subr.bf16.mxu0 %v1599_v15  ;;  %1459 = vmatprep.mubr.msk.bf16.mxu0 %vm497_vm0, %v1639_v33  ;;  %v1627_v38 = vld [vmem:[%s2448_s1 + $0x1ec] ss:$24 sps:$4 sm:$0xff]   ;;  %v1632_v39 = vld [vmem:[%s2448_s1 + $0x180] ss:$24 sps:$4 sm:$0xff]   ;;  %v1633_v42 = vld [vmem:[%s2448_s1 + $0x21c] ss:$24 sps:$4 sm:$0xff]  }
   0xf   :  { %551 = vmatpush1.bf16.msra.mxu1 %v1589_v12  ;;  %v1631_v41 = vld [vmem:[%s2448_s1 + $0x1e8] ss:$24 sps:$4 sm:$0xff]   ;;  %v1642_v44 = vld [vmem:[%s2448_s1 + $0x1e4] ss:$24 sps:$4 sm:$0xff]   ;;  %v1637_v45 = vld [vmem:[%s2448_s1 + $0x218] ss:$24 sps:$4 sm:$0xff]  }
  0x10   :  { %552 = vmatprep.subr.bf16.mxu1 %v1591_v14  ;;  %v1638_v43 = vld [vmem:[%s2448_s1 + $0x1b0] ss:$24 sps:$4 sm:$0xff]   ;;  %v1644_v46 = vld [vmem:[%s2448_s1 + $0x1e0] ss:$24 sps:$4 sm:$0xff]   ;;  %v1645_v47 = vld [vmem:[%s2448_s1 + $0x214] ss:$24 sps:$4 sm:$0xff]  }
  0x11   :  { %508 = vmatpush1.bf16.msra.mxu0 %v1602_v18  ;;  %v2034_v48 = vld [vmem:[%s2447_s0] ss:$8 sps:$4 sm:$0xff]   ;;  %v1650_v50 = vld [vmem:[%s2448_s1 + $0x14] ss:$24 sps:$4 sm:$0xff]   ;;  %v1653_v55 = vld [vmem:[%s2448_s1 + $0x44] ss:$24 sps:$4 sm:$0xff]  }
  0x12   :  { %509 = vmatprep.subr.bf16.mxu0 %v1605_v19  ;;  %v1647_v49 = vld [vmem:[%s2448_s1 + $0x210] ss:$24 sps:$4 sm:$0xff]   ;;  %v1686_v52 = vld [vmem:[%s2450_s3 + $0x104] ss:$8 sps:$4 sm:$0xff]   ;;  %v1689_v54 = vld [vmem:[%s2450_s3 + $0x114] ss:$8 sps:$4 sm:$0xff]  }
  0x13   :  { %553 = vmatpush1.bf16.msra.mxu1 %v1595_v16  ;;  %v1684_v51 = vld [vmem:[%s2450_s3 + $0x100] ss:$8 sps:$4 sm:$0xff]   ;;  %v1687_v56 = vld [vmem:[%s2450_s3 + $0x110] ss:$8 sps:$4 sm:$0xff]   ;;  %v1692_v57 = vld [vmem:[%s2450_s3 + $0x124] ss:$8 sps:$4 sm:$0xff]  }
  0x14   :  { %554 = vmatprep.subr.bf16.mxu1 %v1597_v17  ;;  %v1648_v53 = vld [vmem:[%s2448_s1 + $0x10] ss:$24 sps:$4 sm:$0xff]   ;;  %v1651_v58 = vld [vmem:[%s2448_s1 + $0x40] ss:$24 sps:$4 sm:$0xff]   ;;  %v1656_v59 = vld [vmem:[%s2448_s1 + $0x74] ss:$24 sps:$4 sm:$0xff]  }
  0x15   :  { %510 = vmatpush1.bf16.msra.mxu0 %v1608_v21  ;;  %v1690_v60 = vld [vmem:[%s2450_s3 + $0x120] ss:$8 sps:$4 sm:$0xff]   ;;  %v1698_v61 = vld [vmem:[%s2450_s3 + $0x134] ss:$8 sps:$4 sm:$0xff]   ;;  %v1696_v0 = vld [vmem:[%s2450_s3 + $0x130] ss:$8 sps:$4 sm:$0xff]  }
  0x16   :  { %511 = vmatprep.subr.bf16.mxu0 %v1611_v23  ;;  %v1654_v62 = vld [vmem:[%s2448_s1 + $0x70] ss:$24 sps:$4 sm:$0xff]   ;;  %v1659_v63 = vld [vmem:[%s2448_s1 + $0xa4] ss:$24 sps:$4 sm:$0xff]   ;;  %v1657_v2 = vld [vmem:[%s2448_s1 + $0xa0] ss:$24 sps:$4 sm:$0xff]  }
  0x17   :  { %555 = vmatpush1.bf16.msra.mxu1 %v1601_v20  ;;  %v1704_v1 = vld [vmem:[%s2450_s3 + $0x144] ss:$8 sps:$4 sm:$0xff]   ;;  %v1702_v4 = vld [vmem:[%s2450_s3 + $0x140] ss:$8 sps:$4 sm:$0xff]   ;;  %v1710_v5 = vld [vmem:[%s2450_s3 + $0x154] ss:$8 sps:$4 sm:$0xff]  }
  0x18   :  { %556 = vmatprep.subr.bf16.mxu1 %v1603_v22  ;;  %v1662_v3 = vld [vmem:[%s2448_s1 + $0xd4] ss:$24 sps:$4 sm:$0xff]   ;;  %v1660_v6 = vld [vmem:[%s2448_s1 + $0xd0] ss:$24 sps:$4 sm:$0xff]   ;;  %v1665_v7 = vld [vmem:[%s2448_s1 + $0x104] ss:$24 sps:$4 sm:$0xff]  }
  0x19   :  { %512 = vmatpush1.bf16.msra.mxu0 %v1614_v26  ;;  %v1708_v8 = vld [vmem:[%s2450_s3 + $0x150] ss:$8 sps:$4 sm:$0xff]   ;;  %v1716_v9 = vld [vmem:[%s2450_s3 + $0x164] ss:$8 sps:$4 sm:$0xff]   ;;  %v1714_v12 = vld [vmem:[%s2450_s3 + $0x160] ss:$8 sps:$4 sm:$0xff]  }
  0x1a   :  { %513 = vmatprep.subr.bf16.mxu0 %v1617_v27  ;;  %v1663_v10 = vld [vmem:[%s2448_s1 + $0x100] ss:$24 sps:$4 sm:$0xff]   ;;  %v1668_v11 = vld [vmem:[%s2448_s1 + $0x134] ss:$24 sps:$4 sm:$0xff]   ;;  %v1666_v14 = vld [vmem:[%s2448_s1 + $0x130] ss:$24 sps:$4 sm:$0xff]  }
  0x1b   :  { %557 = vmatpush1.bf16.msra.mxu1 %v1607_v24  ;;  %v1722_v13 = vld [vmem:[%s2450_s3 + $0x174] ss:$8 sps:$4 sm:$0xff]   ;;  %v1720_v16 = vld [vmem:[%s2450_s3 + $0x170] ss:$8 sps:$4 sm:$0xff]   ;;  %v1728_v17 = vld [vmem:[%s2450_s3 + $0x184] ss:$8 sps:$4 sm:$0xff]  }
  0x1c   :  { %558 = vmatprep.subr.bf16.mxu1 %v1609_v25  ;;  %v1671_v15 = vld [vmem:[%s2448_s1 + $0x164] ss:$24 sps:$4 sm:$0xff]   ;;  %v1669_v18 = vld [vmem:[%s2448_s1 + $0x160] ss:$24 sps:$4 sm:$0xff]   ;;  %v1674_v19 = vld [vmem:[%s2448_s1 + $0x194] ss:$24 sps:$4 sm:$0xff]  }
  0x1d   :  { %514 = vmatpush1.bf16.msra.mxu0 %v1620_v29  ;;  %v1726_v20 = vld [vmem:[%s2450_s3 + $0x180] ss:$8 sps:$4 sm:$0xff]   ;;  %v1677_v22 = vld [vmem:[%s2448_s1 + $0x1c4] ss:$24 sps:$4 sm:$0xff]   ;;  %v1732_v24 = vld [vmem:[%s2450_s3 + $0x190] ss:$8 sps:$4 sm:$0xff]  }
  0x1e   :  { %515 = vmatprep.subr.bf16.mxu0 %v1623_v31  ;;  %v1672_v21 = vld [vmem:[%s2448_s1 + $0x190] ss:$24 sps:$4 sm:$0xff]   ;;  %v1734_v23 = vld [vmem:[%s2450_s3 + $0x194] ss:$8 sps:$4 sm:$0xff]   ;;  %v1740_v25 = vld [vmem:[%s2450_s3 + $0x1a4] ss:$8 sps:$4 sm:$0xff]  }
  0x1f   :  { %559 = vmatpush1.bf16.msra.mxu1 %v1613_v28  ;;  %v1675_v26 = vld [vmem:[%s2448_s1 + $0x1c0] ss:$24 sps:$4 sm:$0xff]   ;;  %v1680_v27 = vld [vmem:[%s2448_s1 + $0x1f4] ss:$24 sps:$4 sm:$0xff]   ;;  %v1683_v31 = vld [vmem:[%s2448_s1 + $0x224] ss:$24 sps:$4 sm:$0xff]  }
  0x20   :  { %560 = vmatprep.subr.bf16.mxu1 %v1615_v30  ;;  %v1738_v28 = vld [vmem:[%s2450_s3 + $0x1a0] ss:$8 sps:$4 sm:$0xff]   ;;  %v1746_v29 = vld [vmem:[%s2450_s3 + $0x1b4] ss:$8 sps:$4 sm:$0xff]  }
  0x21   :  { %516 = vmatpush1.bf16.msra.mxu0 %v1626_v35  ;;  %v1678_v30 = vld [vmem:[%s2448_s1 + $0x1f0] ss:$24 sps:$4 sm:$0xff]   ;;  %v1695_v35 = vld [vmem:[%s2450_s3 + $0x4] ss:$8 sps:$4 sm:$0xff]  }
  0x22   :  { %517 = vmatprep.subr.bf16.mxu0 %v1629_v36  ;;  %v1750_v36 = vld [vmem:[%s2450_s3 + $0x1c0] ss:$8 sps:$4 sm:$0xff]  }
  0x23   :  { %561 = vmatpush1.bf16.msra.mxu1 %v1619_v32  ;;  %v1744_v32 = vld [vmem:[%s2450_s3 + $0x1b0] ss:$8 sps:$4 sm:$0xff]  }
  0x24   :  { %562 = vmatprep.subr.bf16.mxu1 %v1621_v34  ;;  %v1681_v34 = vld [vmem:[%s2448_s1 + $0x220] ss:$24 sps:$4 sm:$0xff]  }
  0x25   :  { %518 = vmatpush1.bf16.msra.mxu0 %v1632_v39 }
  0x26   :  { %519 = vmatprep.subr.bf16.mxu0 %v1635_v40 }
  0x27   :  { %563 = vmatpush1.bf16.msra.mxu1 %v1625_v37  ;;  %v1758_v37 = vld [vmem:[%s2450_s3 + $0x1d4] ss:$8 sps:$4 sm:$0xff]  }
  0x28   :  { %564 = vmatprep.subr.bf16.mxu1 %v1627_v38 }
  0x29   :  { %520 = vmatpush1.bf16.msra.mxu0 %v1638_v43 }
  0x2a   :  { %521 = vmatprep.subr.bf16.mxu0 %v1642_v44 }
  0x2b   :  { %565 = vmatpush1.bf16.msra.mxu1 %v1631_v41 }
  0x2c   :  { %566 = vmatprep.subr.bf16.mxu1 %v1633_v42 }
  0x2d   :  { %522 = vmatpush1.bf16.msra.mxu0 %v1644_v46 }
  0x2e   :  { %523 = vmatprep.subr.bf16.mxu0 %v1645_v47 }
  0x2f   :  { %567 = vmatpush1.bf16.msra.mxu1 %v1637_v45 }
  0x30   :  { %1279 = vmatprep.subr.bf16.mxu1 %v1686_v52 }
  0x31   :  { %524 = vmatpush1.bf16.msra.mxu0 %v1647_v49 }
  0x32   :  { %577 = vmatmul.mubr.bf16.vlgmr.msra.gmra.mrb[0].mxu1 %v2034_v48  ;;  %587 = vmatprep.subr.bf16.mxu0 %v1650_v50 }
  0x33   :  { %1280 = vmatpush1.bf16.msra.mxu1 %v1684_v51 }
  0x34   :  { %534 = vmatmul.mubr.bf16.vlgmr.msra.gmra.mrb[0].mxu0 %v2034_v48  ;;  %1281 = vmatprep.subr.bf16.mxu1 %v1689_v54 }
  0x35   :  { %588 = vmatpush1.bf16.msra.mxu0 %v1648_v53  ;;  %1461 = vmatprep.mubr.msk.bf16.mxu0 %vm497_vm0, %v1639_v33  ;;  %v1752_v33 = vld [vmem:[%s2450_s3 + $0x1c4] ss:$8 sps:$4 sm:$0xff]  }
  0x36   :  { %589 = vmatprep.subr.bf16.mxu0 %v1653_v55 }
  0x37   :  { %1282 = vmatpush1.bf16.msra.mxu1 %v1687_v56 }
  0x38   :  { %1283 = vmatprep.subr.bf16.mxu1 %v1692_v57 }
  0x39   :  { %590 = vmatpush1.bf16.msra.mxu0 %v1651_v58 }
  0x3a   :  { %591 = vmatprep.subr.bf16.mxu0 %v1656_v59 }
  0x3b   :  { %1284 = vmatpush1.bf16.msra.mxu1 %v1690_v60 }
  0x3c   :  { %1285 = vmatprep.subr.bf16.mxu1 %v1698_v61 }
  0x3d   :  { %592 = vmatpush1.bf16.msra.mxu0 %v1654_v62 }
  0x3e   :  { %593 = vmatprep.subr.bf16.mxu0 %v1659_v63 }
  0x3f   :  { %1286 = vmatpush1.bf16.msra.mxu1 %v1696_v0 }
  0x40   :  { %1287 = vmatprep.subr.bf16.mxu1 %v1704_v1 }
  0x41   :  { %594 = vmatpush1.bf16.msra.mxu0 %v1657_v2 }
  0x42   :  { %595 = vmatprep.subr.bf16.mxu0 %v1662_v3 }
  0x43   :  { %1288 = vmatpush1.bf16.msra.mxu1 %v1702_v4 }
  0x44   :  { %1289 = vmatprep.subr.bf16.mxu1 %v1710_v5 }
  0x45   :  { %596 = vmatpush1.bf16.msra.mxu0 %v1660_v6 }
  0x46   :  { %597 = vmatprep.subr.bf16.mxu0 %v1665_v7 }
  0x47   :  { %1290 = vmatpush1.bf16.msra.mxu1 %v1708_v8 }
  0x48   :  { %1291 = vmatprep.subr.bf16.mxu1 %v1716_v9 }
  0x49   :  { %598 = vmatpush1.bf16.msra.mxu0 %v1663_v10 }
  0x4a   :  { %599 = vmatprep.subr.bf16.mxu0 %v1668_v11 }
  0x4b   :  { %1292 = vmatpush1.bf16.msra.mxu1 %v1714_v12 }
  0x4c   :  { %1293 = vmatprep.subr.bf16.mxu1 %v1722_v13 }
  0x4d   :  { %600 = vmatpush1.bf16.msra.mxu0 %v1666_v14 }
  0x4e   :  { %601 = vmatprep.subr.bf16.mxu0 %v1671_v15 }
  0x4f   :  { %1294 = vmatpush1.bf16.msra.mxu1 %v1720_v16 }
  0x50   :  { %1295 = vmatprep.subr.bf16.mxu1 %v1728_v17 }
  0x51   :  { %602 = vmatpush1.bf16.msra.mxu0 %v1669_v18 }
  0x52   :  { %603 = vmatprep.subr.bf16.mxu0 %v1674_v19 }
  0x53   :  { %1296 = vmatpush1.bf16.msra.mxu1 %v1726_v20 }
  0x54   :  { %1297 = vmatprep.subr.bf16.mxu1 %v1734_v23 }
  0x55   :  { %604 = vmatpush1.bf16.msra.mxu0 %v1672_v21 }
  0x56   :  { %605 = vmatprep.subr.bf16.mxu0 %v1677_v22 }
  0x57   :  { %1298 = vmatpush1.bf16.msra.mxu1 %v1732_v24 }
  0x58   :  { %1299 = vmatprep.subr.bf16.mxu1 %v1740_v25 }
  0x59   :  { %606 = vmatpush1.bf16.msra.mxu0 %v1675_v26 }
  0x5a   :  { %607 = vmatprep.subr.bf16.mxu0 %v1680_v27 }
  0x5b   :  { %1300 = vmatpush1.bf16.msra.mxu1 %v1738_v28 }
  0x5c   :  { %1301 = vmatprep.subr.bf16.mxu1 %v1746_v29 }
  0x5d   :  { %608 = vmatpush1.bf16.msra.mxu0 %v1678_v30 }
  0x5e   :  { %609 = vmatprep.subr.bf16.mxu0 %v1683_v31 }
  0x5f   :  { %1302 = vmatpush1.bf16.msra.mxu1 %v1744_v32 }
  0x60   :  { %1303 = vmatprep.subr.bf16.mxu1 %v1752_v33 }
  0x61   :  { %10 = vsyncpa [#allocation3], 0  ;;  %610 = vmatpush1.bf16.msra.mxu0 %v1681_v34  ;;  %v1693_v38 = vld [vmem:[%s2450_s3] ss:$8 sps:$4 sm:$0xff]   ;;  %v1701_v39 = vld [vmem:[%s2450_s3 + $0x14] ss:$8 sps:$4 sm:$0xff]   ;;  %v98_v11 = vlaneseq }
  0x62   :  { %1236 = vmatprep.subr.bf16.mxu0 %v1695_v35  ;;  %v1756_v40 = vld [vmem:[%s2450_s3 + $0x1d0] ss:$8 sps:$4 sm:$0xff]   ;;  %v1707_v42 = vld [vmem:[%s2450_s3 + $0x24] ss:$8 sps:$4 sm:$0xff]   ;;  %v1705_v43 = vld [vmem:[%s2450_s3 + $0x20] ss:$8 sps:$4 sm:$0xff]  }
  0x63   :  { %1304 = vmatpush1.bf16.msra.mxu1 %v1750_v36  ;;  %v1699_v41 = vld [vmem:[%s2450_s3 + $0x10] ss:$8 sps:$4 sm:$0xff]   ;;  %v1713_v44 = vld [vmem:[%s2450_s3 + $0x34] ss:$8 sps:$4 sm:$0xff]   ;;  %v1719_v46 = vld [vmem:[%s2450_s3 + $0x44] ss:$8 sps:$4 sm:$0xff]  }
  0x64   :  { %620 = vmatmul.mubr.bf16.vlgmr.msra.gmra.mrb[4].mxu0 %v2034_v48  ;;  %1305 = vmatprep.subr.bf16.mxu1 %v1758_v37  ;;  %v1711_v45 = vld [vmem:[%s2450_s3 + $0x30] ss:$8 sps:$4 sm:$0xff]   ;;  %v1717_v47 = vld [vmem:[%s2450_s3 + $0x40] ss:$8 sps:$4 sm:$0xff]   ;;  %v1725_v48 = vld [vmem:[%s2450_s3 + $0x54] ss:$8 sps:$4 sm:$0xff]  }
  0x65   :  { %1237 = vmatpush1.bf16.msra.mxu0 %v1693_v38  ;;  %v1723_v49 = vld [vmem:[%s2450_s3 + $0x50] ss:$8 sps:$4 sm:$0xff]   ;;  %v1731_v50 = vld [vmem:[%s2450_s3 + $0x64] ss:$8 sps:$4 sm:$0xff]   ;;  %v1729_v51 = vld [vmem:[%s2450_s3 + $0x60] ss:$8 sps:$4 sm:$0xff]  }
  0x66   :  { %1238 = vmatprep.subr.bf16.mxu0 %v1701_v39  ;;  %v1737_v52 = vld [vmem:[%s2450_s3 + $0x74] ss:$8 sps:$4 sm:$0xff]   ;;  %v1735_v53 = vld [vmem:[%s2450_s3 + $0x70] ss:$8 sps:$4 sm:$0xff]   ;;  %v1743_v54 = vld [vmem:[%s2450_s3 + $0x84] ss:$8 sps:$4 sm:$0xff]  }
  0x67   :  { %1306 = vmatpush1.bf16.msra.mxu1 %v1756_v40  ;;  %v1741_v55 = vld [vmem:[%s2450_s3 + $0x80] ss:$8 sps:$4 sm:$0xff]   ;;  %v1749_v56 = vld [vmem:[%s2450_s3 + $0x94] ss:$8 sps:$4 sm:$0xff]   ;;  %v1764_v57 = vld [vmem:[%s2450_s3 + $0x1e4] ss:$8 sps:$4 sm:$0xff]  }
  0x68   :  { %v1762_v58 = vld [vmem:[%s2450_s3 + $0x1e0] ss:$8 sps:$4 sm:$0xff]   ;;  %v1747_v59 = vld [vmem:[%s2450_s3 + $0x90] ss:$8 sps:$4 sm:$0xff]   ;;  %1307 = vmatprep.subr.bf16.mxu1 %v1764_v57  ;;  %v1755_v60 = vld [vmem:[%s2450_s3 + $0xa4] ss:$8 sps:$4 sm:$0xff]  }
  0x69   :  { %1239 = vmatpush1.bf16.msra.mxu0 %v1699_v41  ;;  %v1770_v61 = vld [vmem:[%s2450_s3 + $0x1f4] ss:$8 sps:$4 sm:$0xff]   ;;  %v1768_v62 = vld [vmem:[%s2450_s3 + $0x1f0] ss:$8 sps:$4 sm:$0xff]   ;;  %v1753_v63 = vld [vmem:[%s2450_s3 + $0xa0] ss:$8 sps:$4 sm:$0xff]  }
  0x6a   :  { %1240 = vmatprep.subr.bf16.mxu0 %v1707_v42  ;;  %v1761_v0 = vld [vmem:[%s2450_s3 + $0xb4] ss:$8 sps:$4 sm:$0xff]   ;;  %v1776_v1 = vld [vmem:[%s2450_s3 + $0x204] ss:$8 sps:$4 sm:$0xff]   ;;  %v1759_v2 = vld [vmem:[%s2450_s3 + $0xb0] ss:$8 sps:$4 sm:$0xff]  }
  0x6b   :  { %1308 = vmatpush1.bf16.msra.mxu1 %v1762_v58  ;;  %v1767_v3 = vld [vmem:[%s2450_s3 + $0xc4] ss:$8 sps:$4 sm:$0xff]   ;;  %v1765_v4 = vld [vmem:[%s2450_s3 + $0xc0] ss:$8 sps:$4 sm:$0xff]   ;;  %v1773_v5 = vld [vmem:[%s2450_s3 + $0xd4] ss:$8 sps:$4 sm:$0xff]  }
  0x6c   :  { %1309 = vmatprep.subr.bf16.mxu1 %v1770_v61  ;;  %v1771_v6 = vld [vmem:[%s2450_s3 + $0xd0] ss:$8 sps:$4 sm:$0xff]   ;;  %v1779_v7 = vld [vmem:[%s2450_s3 + $0xe4] ss:$8 sps:$4 sm:$0xff]   ;;  %v1777_v8 = vld [vmem:[%s2450_s3 + $0xe0] ss:$8 sps:$4 sm:$0xff]  }
  0x6d   :  { %1241 = vmatpush1.bf16.msra.mxu0 %v1705_v43  ;;  %v1785_v9 = vld [vmem:[%s2450_s3 + $0xf4] ss:$8 sps:$4 sm:$0xff]   ;;  %v1783_v10 = vld [vmem:[%s2450_s3 + $0xf0] ss:$8 sps:$4 sm:$0xff]   ;;  %v2310_v12 = vshrl.u32 %v98_v11, 7 }
  0x6e   :  { %1242 = vmatprep.subr.bf16.mxu0 %v1713_v44  ;;  %v2316_v14 = vld [vmem:[%s2449_s2] sm:$0x3f] }
  0x6f   :  { %1310 = vmatpush1.bf16.msra.mxu1 %v1768_v62  ;;  %v108_v13 = vsub.s32 2, %v2310_v12  ;;  %v112_v15 = vsub.s32 3, %v2310_v12  ;;  %v100_v17 = vsub.s32 0, %v2310_v12  ;;  %v104_v19 = vsub.s32 1, %v2310_v12  ;;  %v1794_v57 = vld [vmem:[%s2450_s3 + $0x244] ss:$8 sps:$4 sm:$0xff]  }
  0x70   :  { %1322 = vmatprep.subr.bf16.mxu1 %v1776_v1  ;;  %v1792_v58 = vld [vmem:[%s2450_s3 + $0x240] ss:$8 sps:$4 sm:$0xff]   ;;  %v1800_v61 = vld [vmem:[%s2450_s3 + $0x264] ss:$8 sps:$4 sm:$0xff]  }
  0x71   :  { %1243 = vmatpush1.bf16.msra.mxu0 %v1711_v45  ;;  %v109_v16 = vrot.slane %v2316_v14, %v108_v13  ;;  %v113_v18 = vrot.slane %v2316_v14, %v112_v15  ;;  %v101_v23 = vrot.slane %v2316_v14, %v100_v17  ;;  %v105_v26 = vrot.slane %v2316_v14, %v104_v19  ;;  %v1774_v45 = vld [vmem:[%s2450_s3 + $0x200] ss:$8 sps:$4 sm:$0xff]   ;;  %v1806_v1 = vld [vmem:[%s2450_s3 + $0x284] ss:$8 sps:$4 sm:$0xff]   ;;  %v1813_v13 = vld [vmem:[%s2450_s3 + $0x2b0] ss:$8 sps:$4 sm:$0xff]  }
  0x72   :  { %1244 = vmatprep.subr.bf16.mxu0 %v1719_v46  ;;  %v1798_v62 = vld [vmem:[%s2450_s3 + $0x260] ss:$8 sps:$4 sm:$0xff]  }
  0x75   :  { %1245 = vmatpush1.bf16.msra.mxu0 %v1717_v47 }
  0x76   :  { %1246 = vmatprep.subr.bf16.mxu0 %v1725_v48  ;;  %v1782_v48 = vld [vmem:[%s2450_s3 + $0x214] ss:$8 sps:$4 sm:$0xff]  }
  0x79   :  { %1247 = vmatpush1.bf16.msra.mxu0 %v1723_v49 }
  0x7a   :  { %1248 = vmatprep.subr.bf16.mxu0 %v1731_v50 }
  0x7d   :  { %1249 = vmatpush1.bf16.msra.mxu0 %v1729_v51 }
  0x7e   :  { %1250 = vmatprep.subr.bf16.mxu0 %v1737_v52  ;;  %v1780_v52 = vld [vmem:[%s2450_s3 + $0x210] ss:$8 sps:$4 sm:$0xff]  }
  0x81   :  { %1251 = vmatpush1.bf16.msra.mxu0 %v1735_v53  ;;  %v1788_v53 = vld [vmem:[%s2450_s3 + $0x224] ss:$8 sps:$4 sm:$0xff]  }
  0x82   :  { %1252 = vmatprep.subr.bf16.mxu0 %v1743_v54  ;;  %v1786_v54 = vld [vmem:[%s2450_s3 + $0x220] ss:$8 sps:$4 sm:$0xff]  }
  0x85   :  { %1253 = vmatpush1.bf16.msra.mxu0 %v1741_v55  ;;  %v1791_v55 = vld [vmem:[%s2450_s3 + $0x234] ss:$8 sps:$4 sm:$0xff]  }
  0x86   :  { %1254 = vmatprep.subr.bf16.mxu0 %v1749_v56  ;;  %v1789_v56 = vld [vmem:[%s2450_s3 + $0x230] ss:$8 sps:$4 sm:$0xff]  }
  0x89   :  { %1255 = vmatpush1.bf16.msra.mxu0 %v1747_v59  ;;  %v1797_v59 = vld [vmem:[%s2450_s3 + $0x254] ss:$8 sps:$4 sm:$0xff]  }
  0x8a   :  { %1256 = vmatprep.subr.bf16.mxu0 %v1755_v60  ;;  %v1795_v60 = vld [vmem:[%s2450_s3 + $0x250] ss:$8 sps:$4 sm:$0xff]  }
  0x8d   :  { %1257 = vmatpush1.bf16.msra.mxu0 %v1753_v63  ;;  %v1803_v63 = vld [vmem:[%s2450_s3 + $0x274] ss:$8 sps:$4 sm:$0xff]  }
  0x8e   :  { %1258 = vmatprep.subr.bf16.mxu0 %v1761_v0  ;;  %v1801_v0 = vld [vmem:[%s2450_s3 + $0x270] ss:$8 sps:$4 sm:$0xff]  }
  0x91   :  { %1259 = vmatpush1.bf16.msra.mxu0 %v1759_v2  ;;  %v1804_v2 = vld [vmem:[%s2450_s3 + $0x280] ss:$8 sps:$4 sm:$0xff]  }
  0x92   :  { %1260 = vmatprep.subr.bf16.mxu0 %v1767_v3  ;;  %v1809_v3 = vld [vmem:[%s2450_s3 + $0x294] ss:$8 sps:$4 sm:$0xff]  }
  0x95   :  { %1261 = vmatpush1.bf16.msra.mxu0 %v1765_v4  ;;  %v1807_v4 = vld [vmem:[%s2450_s3 + $0x290] ss:$8 sps:$4 sm:$0xff]  }
  0x96   :  { %1262 = vmatprep.subr.bf16.mxu0 %v1773_v5  ;;  %v1812_v5 = vld [vmem:[%s2450_s3 + $0x2a4] ss:$8 sps:$4 sm:$0xff]  }
  0x99   :  { %1263 = vmatpush1.bf16.msra.mxu0 %v1771_v6  ;;  %v116_v6 = vsub.s32 4, %v2310_v12 }
  0x9a   :  { %1264 = vmatprep.subr.bf16.mxu0 %v1779_v7  ;;  %v120_v7 = vsub.s32 5, %v2310_v12 }
  0x9c   :  { %v121_v11 = vrot.slane %v2316_v14, %v120_v7 }
  0x9d   :  { %1265 = vmatpush1.bf16.msra.mxu0 %v1777_v8  ;;  %v1810_v8 = vld [vmem:[%s2450_s3 + $0x2a0] ss:$8 sps:$4 sm:$0xff]  }
  0x9e   :  { %1266 = vmatprep.subr.bf16.mxu0 %v1785_v9  ;;  %v1815_v9 = vld [vmem:[%s2450_s3 + $0x2b4] ss:$8 sps:$4 sm:$0xff]  }
  0xa1   :  { %1267 = vmatpush1.bf16.msra.mxu0 %v1783_v10  ;;  %v117_v10 = vrot.slane %v2316_v14, %v116_v6  ;;  %v1816_v14 = vld [vmem:[%s2450_s3 + $0x2c0] ss:$8 sps:$4 sm:$0xff]  }
 0x105   :  { %v578_v20 = vpop.f32.mrb[0].mxu1 }
 0x106   :  { %v579_v21 = vadd.f32 %v578_v20, %v109_v16  ;;  %v580_v22 = vpop.f32.mrb[1].mxu1 }
 0x107   :  { %v581_v24 = vadd.f32 %v580_v22, %v113_v18  ;;  %v582_v25 = vpop.f32.mrb[2].mxu1  ;;  %v535_v30 = vpop.f32.mrb[0].mxu0 }
 0x108   :  { %v583_v27 = vadd.f32 %v582_v25, %v109_v16  ;;  %v584_v28 = vpop.f32.mrb[3].mxu1  ;;  %v632_v31 = vmax.f32 %v579_v21, 0.0  ;;  %v536_v33 = vadd.f32 %v535_v30, %v101_v23  ;;  %v537_v34 = vpop.f32.mrb[1].mxu0  ;;  %v1818_v16 = vld [vmem:[%s2450_s3 + $0x2c4] ss:$8 sps:$4 sm:$0xff]  }
 0x109   :  { %v585_v29 = vadd.f32 %v584_v28, %v113_v18  ;;  %v633_v35 = vmax.f32 %v581_v24, 0.0  ;;  %v538_v37 = vadd.f32 %v537_v34, %v105_v26  ;;  %v539_v38 = vpop.f32.mrb[2].mxu0  ;;  %v1824_v34 = vld [vmem:[%s2450_s3 + $0x2e4] ss:$8 sps:$4 sm:$0xff]  }
 0x10a   :  { %v638_v32 = vmax.f32 %v583_v27, 0.0  ;;  %v630_v40 = vmax.f32 %v536_v33, 0.0  ;;  %v540_v41 = vadd.f32 %v539_v38, %v101_v23  ;;  %v541_v42 = vpop.f32.mrb[3].mxu0 }
 0x10b   :  { %v639_v36 = vmax.f32 %v585_v29, 0.0  ;;  %v631_v44 = vmax.f32 %v538_v37, 0.0  ;;  %v542_v46 = vadd.f32 %v541_v42, %v105_v26  ;;  %v1821_v29 = vld [vmem:[%s2450_s3 + $0x2d4] ss:$8 sps:$4 sm:$0xff]   ;;  %v1825_v37 = vld [vmem:[%s2450_s3 + $0x2f0] ss:$8 sps:$4 sm:$0xff]  }
 0x10c   :  { %v644_v39 = vpack.c.bf16 %v638_v32, %v632_v31  ;;  %v636_v47 = vmax.f32 %v540_v41, 0.0  ;;  %v1819_v32 = vld [vmem:[%s2450_s3 + $0x2d0] ss:$8 sps:$4 sm:$0xff]   ;;  %v744_v42 = vld [vmem:[%s2451_s4] sm:$0x3] }
 0x10d   :  { %v645_v43 = vpack.c.bf16 %v639_v36, %v633_v35  ;;  %v637_v49 = vmax.f32 %v542_v46, 0.0  ;;  %v1822_v35 = vld [vmem:[%s2450_s3 + $0x2e0] ss:$8 sps:$4 sm:$0xff]   ;;  %v1827_v36 = vld [vmem:[%s2450_s3 + $0x2f4] ss:$8 sps:$4 sm:$0xff]   ;;  %s1852_s3 = smov [#allocation2]  }
 0x10e   :  { %v642_v50 = vpack.c.bf16 %v636_v47, %v630_v40  ;;  %s1374_s19 = sshll.u32 %s1852_s3, 4  ;;  %s1375_s19 = int_to_ptr.vmem [resolvable:$true] %s1374_s19 }
 0x10f   :  { %1311 = vmatprep.mubr.bf16.mxu1 %v645_v43  ;;  %v643_v51 = vpack.c.bf16 %v637_v49, %v631_v44  ;;  %v749_v43 = vrot.slane %v744_v42, %v100_v17  ;;  %v753_v44 = vrot.slane %v744_v42, %v104_v19  ;;  %s1828_s4 = scalar_lea.vmem %s1375_s19, 512  ;;  %p1833_p1 = scmp.lt.s32.totalorder %s1375_s19, %s1375_s19 }
 0x110   :  { %1312 = vmatmul.mubr.bf16.vlgmr.msra.gmra.mrb[4].mxu1 %v644_v39  ;;  %p1829_p0 = scmp.ne.s32.totalorder %s1375_s19, %s1828_s4  ;;  %p1834_p2 = scmp.lt.s32.totalorder %s1828_s4, %s1828_s4 }
 0x111   :  { %1323 = vmatpush1.bf16.msra.mxu1 %v1774_v45  ;;  %1268 = vmatprep.mubr.bf16.mxu0 %v643_v51 }
 0x112   :  { %1324 = vmatprep.subr.bf16.mxu1 %v1782_v48  ;;  %1269 = vmatmul.mubr.bf16.vlgmr.msra.gmra.mrb[8].mxu0 %v642_v50  ;;  %p1835_p3 = por %p1834_p2, %p1833_p1 }
 0x114   :  { %p1836_p4 = pnand %p1835_p3, %p1829_p0 }
 0x115   :  { %1325 = vmatpush1.bf16.msra.mxu1 %v1780_v52 }
 0x116   :  { %1326 = vmatprep.subr.bf16.mxu1 %v1788_v53 }
 0x119   :  { %1327 = vmatpush1.bf16.msra.mxu1 %v1786_v54 }
 0x11a   :  { %1328 = vmatprep.subr.bf16.mxu1 %v1791_v55 }
 0x11d   :  { %1329 = vmatpush1.bf16.msra.mxu1 %v1789_v56 }
 0x11e   :  { %1330 = vmatprep.subr.bf16.mxu1 %v1794_v57 }
 0x121   :  { %1331 = vmatpush1.bf16.msra.mxu1 %v1792_v58 }
 0x122   :  { %1332 = vmatprep.subr.bf16.mxu1 %v1797_v59 }
 0x125   :  { %1333 = vmatpush1.bf16.msra.mxu1 %v1795_v60 }
 0x126   :  { %1334 = vmatprep.subr.bf16.mxu1 %v1800_v61 }
 0x129   :  { %1335 = vmatpush1.bf16.msra.mxu1 %v1798_v62 }
 0x12a   :  { %1336 = vmatprep.subr.bf16.mxu1 %v1803_v63 }
 0x12d   :  { %1337 = vmatpush1.bf16.msra.mxu1 %v1801_v0 }
 0x12e   :  { %1338 = vmatprep.subr.bf16.mxu1 %v1806_v1 }
 0x131   :  { %1339 = vmatpush1.bf16.msra.mxu1 %v1804_v2 }
 0x132   :  { %1340 = vmatprep.subr.bf16.mxu1 %v1809_v3 }
 0x135   :  { %1341 = vmatpush1.bf16.msra.mxu1 %v1807_v4 }
 0x136   :  { %1342 = vmatprep.subr.bf16.mxu1 %v1812_v5 }
 0x137   :  { %v621_v15 = vpop.f32.mrb[4].mxu0 }
 0x138   :  { %v622_v18 = vadd.f32 %v621_v15, %v117_v10  ;;  %v623_v20 = vpop.f32.mrb[5].mxu0 }
 0x139   :  { %1343 = vmatpush1.bf16.msra.mxu1 %v1810_v8  ;;  %v624_v21 = vadd.f32 %v623_v20, %v121_v11  ;;  %v625_v22 = vpop.f32.mrb[6].mxu0 }
 0x13a   :  { %1344 = vmatprep.subr.bf16.mxu1 %v1815_v9  ;;  %v634_v23 = vmax.f32 %v622_v18, 0.0  ;;  %v626_v24 = vadd.f32 %v625_v22, %v117_v10  ;;  %v627_v25 = vpop.f32.mrb[7].mxu0 }
 0x13b   :  { %v635_v26 = vmax.f32 %v624_v21, 0.0  ;;  %v628_v27 = vadd.f32 %v627_v25, %v121_v11 }
 0x13c   :  { %v640_v28 = vmax.f32 %v626_v24, 0.0 }
 0x13d   :  { %1345 = vmatpush1.bf16.msra.mxu1 %v1813_v13  ;;  %v641_v30 = vmax.f32 %v628_v27, 0.0 }
 0x13e   :  { %1346 = vmatprep.subr.bf16.mxu1 %v1818_v16  ;;  %v646_v31 = vpack.c.bf16 %v640_v28, %v634_v23 }
 0x13f   :  { %v647_v33 = vpack.c.bf16 %v641_v30, %v635_v26 }
 0x141   :  { %1347 = vmatpush1.bf16.msra.mxu1 %v1816_v14  ;;  %1354 = vmatprep.mubr.bf16.mxu1 %v647_v33 }
 0x142   :  { %1348 = vmatprep.subr.bf16.mxu1 %v1821_v29 }
 0x145   :  { %1349 = vmatpush1.bf16.msra.mxu1 %v1819_v32 }
 0x146   :  { %1350 = vmatprep.subr.bf16.mxu1 %v1824_v34 }
 0x149   :  { %1351 = vmatpush1.bf16.msra.mxu1 %v1822_v35 }
 0x14a   :  { %1352 = vmatprep.subr.bf16.mxu1 %v1827_v36 }
 0x14d   :  { %1353 = vmatpush1.bf16.msra.mxu1 %v1825_v37 }
 0x150   :  { %1355 = vmatmul.mubr.bf16.vlgmr.msra.gmra.mrb[4].mxu1 %v646_v31 }
 0x1e5   :  { %v1270_v38 = vpop.f32.mrb[8].mxu0 }
 0x1e6   :  { %v1272_v39 = vpop.f32.mrb[9].mxu0  ;;  %v1271_v45 = vadd.f32 %v1270_v38, %v749_v43 }
 0x1e7   :  { %v1274_v40 = vpop.f32.mrb[10].mxu0  ;;  %v1273_v46 = vadd.f32 %v1272_v39, %v753_v44 }
 0x1e8   :  { %v1276_v41 = vpop.f32.mrb[11].mxu0  ;;  %v1275_v48 = vadd.f32 %v1274_v40, %v749_v43 }
 0x1e9   :  { %v1277_v51 = vadd.f32 %v1276_v41, %v753_v44 }
 0x223   :  { %v1356_v47 = vpop.f32.mrb[4].mxu1 }
 0x224   :  { %v1559_v49 = vadd.f32 %v1356_v47, %v1271_v45  ;;  %v1358_v50 = vpop.f32.mrb[5].mxu1 }
 0x225   :  { %v1561_v52 = vadd.f32 %v1358_v50, %v1273_v46  ;;  %v1360_v53 = vpop.f32.mrb[6].mxu1 }
 0x226   :  { %1365 = vst [vmem:[#allocation2] sm:$0xff] %v1559_v49  ;;  %v1563_v54 = vadd.f32 %v1360_v53, %v1275_v48  ;;  %v1362_v55 = vpop.f32.mrb[7].mxu1 }
 0x227   :  { %1366 = vst.msk [vmem:[#allocation2 + $0x8] sm:$0xff] %vm497_vm0, %v1561_v52  ;;  %v1565_v17 = vadd.f32 %v1362_v55, %v1277_v51 }
 0x228   :  { %1367 = vst [vmem:[#allocation2 + $0x10] sm:$0xff] %v1563_v54 }
 0x229   :  { %1368 = vst.msk [vmem:[#allocation2 + $0x18] sm:$0xff] %vm497_vm0, %v1565_v17 }
 0x22a   :  { %1839 = shalt.err (!%p1836_p4)
}
 0x22b   :  { %s1840_s22 = scalar_lea.hbm %s2452_s5, 512 }
 0x22c   :  { %p1841_p5 = scmp.ne.s32.totalorder %s2452_s5, %s1840_s22  ;;  %p1844_p6 = scmp.lt.u32.totalorder %s1840_s22, %s2452_s5 }
 0x22e   :  { %p1846_p7 = pnand %p1844_p6, %p1841_p5 }
 0x230   :  { %1849 = shalt.err (!%p1846_p7)
}
 0x231   :  { %s1853_s26 = smov 256   ;;  %s1854_s27 = smov 16  }
 0x232   :  { %1380 = dma.vmem_to_hbm [thread:$0]  %s1375_s19, 512, %s2452_s5, [#allocation3], %s1853_s26, %s1853_s26, %s1854_s27  }
 0x233   :  { %1850 = dma.done.wait [#allocation3], 512  }
 0x234   :  { %1851 = vsyncadd [#allocation3], 4294966784 }
 0x235   :  { %1384 = vsyncpa [#allocation3], 1 }

</bundles_post_ra>
